<compile_context>
chip_gen: v5e
topology: v5e:2x2
jax: 0.10.0
libtpu: 0.0.40
codegen_flags: <defaults>
</compile_context>

<pallas_src>
import functools

import jax
import jax.numpy as jnp
from jax.experimental import pallas as pl
from jax.experimental.pallas import tpu as pltpu


# ----------------------------------------------------------------------------- kernel
def mlp_kernel(x_ref, w1_ref, b1_ref, w2_ref, b2_ref, w3_ref, b3_ref,
               w4_ref, b4_ref, o_ref):
    """One batch-tile of the full 4-layer MLP forward (bf16 MXU, f32 accumulate)."""
    x = x_ref[...]                                                      # (TB, 896) bf16
    h = jnp.dot(x, w1_ref[...], preferred_element_type=jnp.float32) + b1_ref[...]
    h = jnp.maximum(h, 0.0).astype(jnp.bfloat16)                        # relu1
    h = jnp.dot(h, w2_ref[...], preferred_element_type=jnp.float32) + b2_ref[...]
    h = jnp.maximum(h, 0.0).astype(jnp.bfloat16)                        # relu2
    h = jnp.dot(h, w3_ref[...], preferred_element_type=jnp.float32) + b3_ref[...]
    h = jnp.maximum(h, 0.0).astype(jnp.bfloat16)                        # relu3
    out = jnp.dot(h, w4_ref[...], preferred_element_type=jnp.float32) + b4_ref[...]
    o_ref[...] = out                                                    # (TB, 128) f32, lane-dense


# ----------------------------------------------------------------------------- helpers
def _round_up(n, m):
    return ((n + m - 1) // m) * m


def _cdiv(a, b):
    return (a + b - 1) // b


def _pad_hidden(w):
    """Lane-dense hidden width: multiple of 128; prefer 256 alignment when cheap
    (v6e/v7x MXU passes are 256 wide), never blow a 128-wide layer up to 256."""
    p = _round_up(w, 128)
    if p > 128 and p % 256 != 0 and (_round_up(w, 256) - w) <= 64:
        p = _round_up(w, 256)
    return p


def _default_vmem_limit_bytes():
    """~3/4 of physical VMEM: ~96 MiB on v5e/v6e (128 MiB), ~48 MiB on v7x (64 MiB)."""
    cap = None
    try:
        cap = getattr(pltpu.get_tpu_info(), "vmem_capacity_bytes", None)
    except Exception:
        cap = None
    if not cap:
        cap = 64 << 20  # conservative fallback (v7x-sized)
    return int(min(100 << 20, (cap * 3) // 4))


@functools.lru_cache(maxsize=1)
def _buffered_one_supported():
    """Probe (once) whether this jax build lowers pipeline_mode=pl.Buffered(1).

    The broad except is confined to this tiny probe, so genuine bugs in the real
    kernel are never masked by the fallback path.
    """
    def probe_kernel(x_ref, w_ref, o_ref):
        o_ref[...] = x_ref[...] + w_ref[...]

    try:
        probe = pl.pallas_call(
            probe_kernel,
            out_shape=jax.ShapeDtypeStruct((16, 128), jnp.float32),
            grid_spec=pltpu.PrefetchScalarGridSpec(
                num_scalar_prefetch=0,
                grid=(2,),
                in_specs=[
                    pl.BlockSpec((8, 128), lambda i: (i, 0)),
                    pl.BlockSpec((8, 128), lambda i: (0, 0),
                                 pipeline_mode=pl.Buffered(1)),
                ],
                out_specs=pl.BlockSpec((8, 128), lambda i: (i, 0)),
            ),
        )
        jax.jit(probe).lower(jax.ShapeDtypeStruct((16, 128), jnp.float32),
                             jax.ShapeDtypeStruct((8, 128), jnp.float32)).compile()
        return True
    except Exception:
        return False


# ----------------------------------------------------------------------------- forward
@functools.partial(jax.jit,
                   static_argnames=("max_tile_b", "vmem_limit_bytes",
                                    "single_buffer_weights"))
def _forward(x, params, max_tile_b, vmem_limit_bytes, single_buffer_weights):
    w1, b1, w2, b2, w3, b3, w4, b4 = params
    B = x.shape[0]
    d_in = 28 * 28
    d_out = w4.shape[1]                                   # 10
    h1, h2, h3 = w1.shape[1], w2.shape[1], w3.shape[1]

    # ---- lane-dense padded feature dims (zero padding is exact: relu(0)=0 and
    #      the padded weight rows/cols & bias lanes are zero).
    d_in_p = _round_up(d_in, 128)                         # 784 -> 896
    h1_p, h2_p, h3_p = _pad_hidden(h1), _pad_hidden(h2), _pad_hidden(h3)
    d_out_p = _round_up(d_out, 128)                       # 10  -> 128

    # ---- batch tiling: balanced tiles (multiple of 16 for bf16 sublane packing),
    #      and >= 2 grid steps whenever there is enough work so v7x's second
    #      TensorCore gets a share of the "parallel" batch axis.
    b16 = _round_up(B, 16)
    n_steps = max(1, _cdiv(b16, max_tile_b))
    if n_steps == 1 and b16 >= 32:
        n_steps = 2
    tile_b = _round_up(_cdiv(b16, n_steps), 16)
    b_pad = tile_b * n_steps

    # ---- cast to bf16 BEFORE padding: the padded x copy is written exactly once
    #      (in bf16), and reshape/cast/pad fuse under jit with the slice below.
    x_bf = jnp.pad(x.reshape(B, d_in).astype(jnp.bfloat16),
                   ((0, b_pad - B), (0, d_in_p - d_in)))

    # ---- bf16 weights (padded), f32 biases (padded)
    w1b = jnp.pad(w1.astype(jnp.bfloat16), ((0, d_in_p - d_in), (0, h1_p - h1)))
    w2b = jnp.pad(w2.astype(jnp.bfloat16), ((0, h1_p - h1), (0, h2_p - h2)))
    w3b = jnp.pad(w3.astype(jnp.bfloat16), ((0, h2_p - h2), (0, h3_p - h3)))
    w4b = jnp.pad(w4.astype(jnp.bfloat16), ((0, h3_p - h3), (0, d_out_p - d_out)))
    b1f = jnp.pad(b1.astype(jnp.float32), ((0, 0), (0, h1_p - h1)))
    b2f = jnp.pad(b2.astype(jnp.float32), ((0, 0), (0, h2_p - h2)))
    b3f = jnp.pad(b3.astype(jnp.float32), ((0, 0), (0, h3_p - h3)))
    b4f = jnp.pad(b4.astype(jnp.float32), ((0, 0), (0, d_out_p - d_out)))

    if single_buffer_weights:
        # grid-invariant (resident) blocks don't need double buffering
        resident = lambda shape: pl.BlockSpec(shape, lambda i: (0, 0),
                                              pipeline_mode=pl.Buffered(1))
    else:
        resident = lambda shape: pl.BlockSpec(shape, lambda i: (0, 0))

    out_padded = pl.pallas_call(
        mlp_kernel,
        out_shape=jax.ShapeDtypeStruct((b_pad, d_out_p), jnp.float32),
        grid_spec=pltpu.PrefetchScalarGridSpec(
            num_scalar_prefetch=0,
            grid=(n_steps,),
            in_specs=[
                pl.BlockSpec((tile_b, d_in_p), lambda i: (i, 0)),   # x tile (pipelined)
                resident((d_in_p, h1_p)),   resident((1, h1_p)),
                resident((h1_p, h2_p)),     resident((1, h2_p)),
                resident((h2_p, h3_p)),     resident((1, h3_p)),
                resident((h3_p, d_out_p)),  resident((1, d_out_p)),
            ],
            out_specs=pl.BlockSpec((tile_b, d_out_p), lambda i: (i, 0)),
        ),
        compiler_params=pltpu.CompilerParams(
            dimension_semantics=("parallel",),
            vmem_limit_bytes=vmem_limit_bytes),
    )(x_bf, w1b, b1f, w2b, b2f, w3b, b3f, w4b, b4f)

    return out_padded[:B, :d_out]


def width_variable_net_forward(x, params, *, max_tile_b=1024, vmem_limit_bytes=None):
    """x: (B, 1, 28, 28) or (B, 784) float32. Returns logits (B, 10) float32."""
    if vmem_limit_bytes is None:
        vmem_limit_bytes = _default_vmem_limit_bytes()
    return _forward(x, params,
                    max_tile_b=int(max_tile_b),
                    vmem_limit_bytes=int(vmem_limit_bytes),
                    single_buffer_weights=_buffered_one_supported())


# ----------------------------------------------------------------------------- params / reference
def init_params(key, layer_sizes):
    """Deterministic synthetic init (PyTorch-style uniform fan_in bounds)."""
    dims = [28 * 28, layer_sizes[0], layer_sizes[1], layer_sizes[2], 10]
    params = []
    for li in range(4):
        fan_in, fan_out = dims[li], dims[li + 1]
        key, kw, kb = jax.random.split(key, 3)
        bound = 1.0 / jnp.sqrt(fan_in)
        # stored as (in, out) so the kernel does x @ W
        w = jax.random.uniform(kw, (fan_in, fan_out), jnp.float32, -bound, bound)
        b = jax.random.uniform(kb, (1, fan_out), jnp.float32, -bound, bound)
        params += [w, b]
    return tuple(params)


def reference_forward(x, params):
    """Plain-JAX reference with the same bf16-operand / f32-accumulate scheme."""
    w1, b1, w2, b2, w3, b3, w4, b4 = params

    def lin(h, w, b):
        return jnp.dot(h.astype(jnp.bfloat16), w.astype(jnp.bfloat16),
                       preferred_element_type=jnp.float32) + b

    h = x.reshape(x.shape[0], -1).astype(jnp.float32)
    h = jnp.maximum(lin(h, w1, b1), 0.0)
    h = jnp.maximum(lin(h, w2, b2), 0.0)
    h = jnp.maximum(lin(h, w3, b3), 0.0)
    return lin(h, w4, b4)


# ----------------------------------------------------------------------------- demo
if __name__ == "__main__":
    layer_sizes = (96, 128, 64)        # non-128 widths exercise the hidden padding
    batch = 48                         # exercises the >=2-step balanced batch grid

    key = jax.random.PRNGKey(0)
    key, kx = jax.random.split(key)
    x = jax.random.normal(kx, (batch, 1, 28, 28), jnp.float32)   # NCHW like PyTorch

    params = init_params(jax.random.PRNGKey(0), layer_sizes)

    out = width_variable_net_forward(x, params)
    out = jax.block_until_ready(out)

    ref = reference_forward(x, params)
    assert out.shape == (batch, 10), out.shape
    assert jnp.allclose(out, ref, atol=1e-2, rtol=1e-2), "mismatch vs reference"

    print("KERNEL_OK")
</pallas_src>

<mosaic_0001>
module attributes {stable_mosaic.version = 11 : i64} {
  func.func @mlp_kernel(%arg0: i32, %arg1: memref<32x896xbf16, #tpu.memory_space<vmem>>, %arg2: memref<896x128xbf16, #tpu.memory_space<vmem>>, %arg3: memref<1x128xf32, #tpu.memory_space<vmem>>, %arg4: memref<128x128xbf16, #tpu.memory_space<vmem>>, %arg5: memref<1x128xf32, #tpu.memory_space<vmem>>, %arg6: memref<128x128xbf16, #tpu.memory_space<vmem>>, %arg7: memref<1x128xf32, #tpu.memory_space<vmem>>, %arg8: memref<128x128xbf16, #tpu.memory_space<vmem>>, %arg9: memref<1x128xf32, #tpu.memory_space<vmem>>, %arg10: memref<32x128xf32, #tpu.memory_space<vmem>>) attributes {dimension_semantics = [#tpu.dimension_semantics<parallel>], iteration_bounds = array<i64: 2>, scalar_prefetch = 0 : i64, scratch_operands = 0 : i64, tpu.core_type = #tpu.core_type<tc>, window_params = [{transform_indices = @transform_0, window_bounds = array<i64: 32, 896>}, {pipeline_mode = #tpu.pipeline_mode<synchronous>, transform_indices = @transform_1, window_bounds = array<i64: 896, 128>}, {pipeline_mode = #tpu.pipeline_mode<synchronous>, transform_indices = @transform_2, window_bounds = array<i64: 1, 128>}, {pipeline_mode = #tpu.pipeline_mode<synchronous>, transform_indices = @transform_3, window_bounds = array<i64: 128, 128>}, {pipeline_mode = #tpu.pipeline_mode<synchronous>, transform_indices = @transform_4, window_bounds = array<i64: 1, 128>}, {pipeline_mode = #tpu.pipeline_mode<synchronous>, transform_indices = @transform_5, window_bounds = array<i64: 128, 128>}, {pipeline_mode = #tpu.pipeline_mode<synchronous>, transform_indices = @transform_6, window_bounds = array<i64: 1, 128>}, {pipeline_mode = #tpu.pipeline_mode<synchronous>, transform_indices = @transform_7, window_bounds = array<i64: 128, 128>}, {pipeline_mode = #tpu.pipeline_mode<synchronous>, transform_indices = @transform_8, window_bounds = array<i64: 1, 128>}, {transform_indices = @transform_9, window_bounds = array<i64: 32, 128>}]} {
    %c0 = arith.constant 0 : index
    %c0_0 = arith.constant 0 : index
    %0 = vector.load %arg1[%c0, %c0_0] : memref<32x896xbf16, #tpu.memory_space<vmem>>, vector<32x896xbf16>
    %c0_1 = arith.constant 0 : index
    %c0_2 = arith.constant 0 : index
    %1 = vector.load %arg2[%c0_1, %c0_2] : memref<896x128xbf16, #tpu.memory_space<vmem>>, vector<896x128xbf16>
    %cst = arith.constant dense<0.000000e+00> : vector<32x128xf32>
    %2 = tpu.matmul %0, %1, %cst {dimension_numbers = #tpu.dot_dimension_numbers<[1], [0], [0], [1], [0, 0, 1, 1], [], []>} : vector<32x896xbf16>, vector<896x128xbf16>, vector<32x128xf32> -> vector<32x128xf32>
    %c0_3 = arith.constant 0 : index
    %c0_4 = arith.constant 0 : index
    %3 = vector.load %arg3[%c0_3, %c0_4] : memref<1x128xf32, #tpu.memory_space<vmem>>, vector<1x128xf32>
    %4 = vector.broadcast %3 : vector<1x128xf32> to vector<32x128xf32>
    %5 = arith.addf %2, %4 : vector<32x128xf32>
    %cst_5 = arith.constant 0.000000e+00 : f32
    %6 = vector.broadcast %cst_5 : f32 to vector<32x128xf32>
    %7 = arith.maximumf %5, %6 : vector<32x128xf32>
    %8 = arith.truncf %7 : vector<32x128xf32> to vector<32x128xbf16>
    %c0_6 = arith.constant 0 : index
    %c0_7 = arith.constant 0 : index
    %9 = vector.load %arg4[%c0_6, %c0_7] : memref<128x128xbf16, #tpu.memory_space<vmem>>, vector<128x128xbf16>
    %cst_8 = arith.constant dense<0.000000e+00> : vector<32x128xf32>
    %10 = tpu.matmul %8, %9, %cst_8 {dimension_numbers = #tpu.dot_dimension_numbers<[1], [0], [0], [1], [0, 0, 1, 1], [], []>} : vector<32x128xbf16>, vector<128x128xbf16>, vector<32x128xf32> -> vector<32x128xf32>
    %c0_9 = arith.constant 0 : index
    %c0_10 = arith.constant 0 : index
    %11 = vector.load %arg5[%c0_9, %c0_10] : memref<1x128xf32, #tpu.memory_space<vmem>>, vector<1x128xf32>
    %12 = vector.broadcast %11 : vector<1x128xf32> to vector<32x128xf32>
    %13 = arith.addf %10, %12 : vector<32x128xf32>
    %cst_11 = arith.constant 0.000000e+00 : f32
    %14 = vector.broadcast %cst_11 : f32 to vector<32x128xf32>
    %15 = arith.maximumf %13, %14 : vector<32x128xf32>
    %16 = arith.truncf %15 : vector<32x128xf32> to vector<32x128xbf16>
    %c0_12 = arith.constant 0 : index
    %c0_13 = arith.constant 0 : index
    %17 = vector.load %arg6[%c0_12, %c0_13] : memref<128x128xbf16, #tpu.memory_space<vmem>>, vector<128x128xbf16>
    %cst_14 = arith.constant dense<0.000000e+00> : vector<32x128xf32>
    %18 = tpu.matmul %16, %17, %cst_14 {dimension_numbers = #tpu.dot_dimension_numbers<[1], [0], [0], [1], [0, 0, 1, 1], [], []>} : vector<32x128xbf16>, vector<128x128xbf16>, vector<32x128xf32> -> vector<32x128xf32>
    %c0_15 = arith.constant 0 : index
    %c0_16 = arith.constant 0 : index
    %19 = vector.load %arg7[%c0_15, %c0_16] : memref<1x128xf32, #tpu.memory_space<vmem>>, vector<1x128xf32>
    %20 = vector.broadcast %19 : vector<1x128xf32> to vector<32x128xf32>
    %21 = arith.addf %18, %20 : vector<32x128xf32>
    %cst_17 = arith.constant 0.000000e+00 : f32
    %22 = vector.broadcast %cst_17 : f32 to vector<32x128xf32>
    %23 = arith.maximumf %21, %22 : vector<32x128xf32>
    %24 = arith.truncf %23 : vector<32x128xf32> to vector<32x128xbf16>
    %c0_18 = arith.constant 0 : index
    %c0_19 = arith.constant 0 : index
    %25 = vector.load %arg8[%c0_18, %c0_19] : memref<128x128xbf16, #tpu.memory_space<vmem>>, vector<128x128xbf16>
    %cst_20 = arith.constant dense<0.000000e+00> : vector<32x128xf32>
    %26 = tpu.matmul %24, %25, %cst_20 {dimension_numbers = #tpu.dot_dimension_numbers<[1], [0], [0], [1], [0, 0, 1, 1], [], []>} : vector<32x128xbf16>, vector<128x128xbf16>, vector<32x128xf32> -> vector<32x128xf32>
    %c0_21 = arith.constant 0 : index
    %c0_22 = arith.constant 0 : index
    %27 = vector.load %arg9[%c0_21, %c0_22] : memref<1x128xf32, #tpu.memory_space<vmem>>, vector<1x128xf32>
    %28 = vector.broadcast %27 : vector<1x128xf32> to vector<32x128xf32>
    %29 = arith.addf %26, %28 : vector<32x128xf32>
    %c0_23 = arith.constant 0 : index
    %c0_24 = arith.constant 0 : index
    %30 = vector.load %arg10[%c0_23, %c0_24] : memref<32x128xf32, #tpu.memory_space<vmem>>, vector<32x128xf32>
    tpu.vector_store %arg10[%c0_23, %c0_24], %29 {strides = array<i32>} : memref<32x128xf32, #tpu.memory_space<vmem>>, vector<32x128xf32>,
    return
  }
  func.func @transform_0(%arg0: i32) -> (i32, i32) {
    %c0_i32 = arith.constant 0 : i32
    %c0_i32_0 = arith.constant 0 : i32
    return %arg0, %c0_i32 : i32, i32
  }
  func.func @transform_1(%arg0: i32) -> (i32, i32) {
    %c0_i32 = arith.constant 0 : i32
    %c0_i32_0 = arith.constant 0 : i32
    %c0_i32_1 = arith.constant 0 : i32
    return %c0_i32, %c0_i32_0 : i32, i32
  }
  func.func @transform_2(%arg0: i32) -> (i32, i32) {
    %c0_i32 = arith.constant 0 : i32
    %c0_i32_0 = arith.constant 0 : i32
    %c0_i32_1 = arith.constant 0 : i32
    return %c0_i32, %c0_i32_0 : i32, i32
  }
  func.func @transform_3(%arg0: i32) -> (i32, i32) {
    %c0_i32 = arith.constant 0 : i32
    %c0_i32_0 = arith.constant 0 : i32
    %c0_i32_1 = arith.constant 0 : i32
    return %c0_i32, %c0_i32_0 : i32, i32
  }
  func.func @transform_4(%arg0: i32) -> (i32, i32) {
    %c0_i32 = arith.constant 0 : i32
    %c0_i32_0 = arith.constant 0 : i32
    %c0_i32_1 = arith.constant 0 : i32
    return %c0_i32, %c0_i32_0 : i32, i32
  }
  func.func @transform_5(%arg0: i32) -> (i32, i32) {
    %c0_i32 = arith.constant 0 : i32
    %c0_i32_0 = arith.constant 0 : i32
    %c0_i32_1 = arith.constant 0 : i32
    return %c0_i32, %c0_i32_0 : i32, i32
  }
  func.func @transform_6(%arg0: i32) -> (i32, i32) {
    %c0_i32 = arith.constant 0 : i32
    %c0_i32_0 = arith.constant 0 : i32
    %c0_i32_1 = arith.constant 0 : i32
    return %c0_i32, %c0_i32_0 : i32, i32
  }
  func.func @transform_7(%arg0: i32) -> (i32, i32) {
    %c0_i32 = arith.constant 0 : i32
    %c0_i32_0 = arith.constant 0 : i32
    %c0_i32_1 = arith.constant 0 : i32
    return %c0_i32, %c0_i32_0 : i32, i32
  }
  func.func @transform_8(%arg0: i32) -> (i32, i32) {
    %c0_i32 = arith.constant 0 : i32
    %c0_i32_0 = arith.constant 0 : i32
    %c0_i32_1 = arith.constant 0 : i32
    return %c0_i32, %c0_i32_0 : i32, i32
  }
  func.func @transform_9(%arg0: i32) -> (i32, i32) {
    %c0_i32 = arith.constant 0 : i32
    %c0_i32_0 = arith.constant 0 : i32
    return %arg0, %c0_i32 : i32, i32
  }
}

</mosaic_0001>

<bundles_post_ra>
// kernel: _forward.1
= control target key start
LH: loop header
LB: loop body
LE: loop exit
PB: predicated region body
PF: predicated region fallthrough
CT: control target
= control target key end

     0   :  { %s1919_s30 = smov 0   ;;  %s2222_s0 = inlined_call_operand.vmem [shape: bf16[64,896], index: 0, kind: input, shape index: {}]   ;;  %s2223_s1 = inlined_call_operand.vmem [shape: bf16[896,128], index: 1, kind: input, shape index: {}]   ;;  %s2224_s2 = inlined_call_operand.vmem [shape: f32[1,128], index: 2, kind: input, shape index: {}]   ;;  %s2225_s3 = inlined_call_operand.vmem [shape: bf16[128,128], index: 3, kind: input, shape index: {}]   ;;  %s2226_s4 = inlined_call_operand.vmem [shape: f32[1,128], index: 4, kind: input, shape index: {}]   ;;  %s2227_s5 = inlined_call_operand.vmem [shape: bf16[128,128], index: 5, kind: input, shape index: {}]   ;;  %s2228_s6 = inlined_call_operand.vmem [shape: f32[1,128], index: 6, kind: input, shape index: {}]   ;;  %s2229_s7 = inlined_call_operand.vmem [shape: bf16[128,128], index: 7, kind: input, shape index: {}]   ;;  %s2230_s8 = inlined_call_operand.vmem [shape: f32[1,128], index: 8, kind: input, shape index: {}]   ;;  %s2231_s9 = inlined_call_operand.vmem [shape: f32[64,128], index: 9, kind: output, shape index: {}]  }
   0x1 LB: > { %s1351_s10 = sadd.s32 4294967295, %s1867_s30   ;;  %p1355_p0 = scmp.ge.s32.totalorder %s1867_s30, 1  ;;  %s1867_s30 = sphi %s1919_s30, %s19_s30  }
   0x2   : > { %p289_p1 = scmp.lt.s32.totalorder %s1867_s30, 3 }
   0x4   : > { %p290_p2 = pnand %p1355_p0, %p289_p1 }
   0x5   : > { %s1356_s16 = sshll.u32 (!%p290_p2), %s1351_s10, 2 }
   0x6   : > { %293 = sbr.rel (%p290_p2) target bundleno = 674 (0x2a2), region = 56  ;;  %p327_p3 = scmp.lt.s32.totalorder (!%p290_p2), %s1356_s16, 7 }
   0xb   : > { %v1759_v0 = vld [vmem:[%s2223_s1 + $0x38] sm:$0xff]  ;;  %v1758_v4 = vld [vmem:[%s2223_s1 + $0x30] sm:$0xff]  ;;  %v1757_v8 = vld [vmem:[%s2223_s1 + $0x28] sm:$0xff]  ;;  %s2233_s16 = smov (!%p327_p3, %s1356_s16), 7 }
   0xc   : > { %v1767_v1 = vld [vmem:[%s2223_s1 + $0x78] sm:$0xff]  ;;  %879 = vmatpush.bf16.msra.mxu0 %v1759_v0  ;;  %v1766_v5 = vld [vmem:[%s2223_s1 + $0x70] sm:$0xff]  ;;  %v1765_v9 = vld [vmem:[%s2223_s1 + $0x68] sm:$0xff]  ;;  %s1848_s18 = smul.u32 28, %s2233_s16  ;;  %s1359_s13 = sshll.u32 %s2233_s16, 3 }
   0xd   : > { %v1775_v2 = vld [vmem:[%s2223_s1 + $0xb8] sm:$0xff]  ;;  %898 = vmatpush.bf16.msra.mxu1 %v1767_v1  ;;  %v1774_v6 = vld [vmem:[%s2223_s1 + $0xb0] sm:$0xff]  ;;  %v1773_v10 = vld [vmem:[%s2223_s1 + $0xa8] sm:$0xff] }
   0xe   : > { %v1783_v3 = vld [vmem:[%s2223_s1 + $0xf8] sm:$0xff]  ;;  %917 = vmatpush.bf16.msra.mxu2 %v1775_v2  ;;  %v1782_v7 = vld [vmem:[%s2223_s1 + $0xf0] sm:$0xff]  ;;  %v1781_v11 = vld [vmem:[%s2223_s1 + $0xe8] sm:$0xff]  ;;  %s2014_s11 = scalar_lea.vmem %s2222_s0, %s1848_s18  ;;  %s337_s18 = scalar_lea.vmem %s2231_s9, %s1359_s13 }
   0xf   : > { %936 = vmatpush.bf16.msra.mxu3 %v1783_v3  ;;  %v1756_v12 = vld [vmem:[%s2223_s1 + $0x20] sm:$0xff]  ;;  %v1755_v16 = vld [vmem:[%s2223_s1 + $0x18] sm:$0xff]  ;;  %v1754_v20 = vld [vmem:[%s2223_s1 + $0x10] sm:$0xff] }
  0x10   : > { %880 = vmatpush.bf16.msra.mxu0 %v1758_v4  ;;  %v1764_v13 = vld [vmem:[%s2223_s1 + $0x60] sm:$0xff]  ;;  %v1763_v17 = vld [vmem:[%s2223_s1 + $0x58] sm:$0xff]  ;;  %v1762_v21 = vld [vmem:[%s2223_s1 + $0x50] sm:$0xff] }
  0x11   : > { %899 = vmatpush.bf16.msra.mxu1 %v1766_v5  ;;  %v1772_v14 = vld [vmem:[%s2223_s1 + $0xa0] sm:$0xff]  ;;  %v1771_v18 = vld [vmem:[%s2223_s1 + $0x98] sm:$0xff]  ;;  %v1770_v22 = vld [vmem:[%s2223_s1 + $0x90] sm:$0xff] }
  0x12   : > { %918 = vmatpush.bf16.msra.mxu2 %v1774_v6  ;;  %v1780_v15 = vld [vmem:[%s2223_s1 + $0xe0] sm:$0xff]  ;;  %v1779_v19 = vld [vmem:[%s2223_s1 + $0xd8] sm:$0xff]  ;;  %v1778_v23 = vld [vmem:[%s2223_s1 + $0xd0] sm:$0xff] }
  0x13   : > { %937 = vmatpush.bf16.msra.mxu3 %v1782_v7  ;;  %v1753_v24 = vld [vmem:[%s2223_s1 + $0x8] sm:$0xff]  ;;  %v1752_v28 = vld [vmem:[%s2223_s1] sm:$0xff]  ;;  %v1741_v33 = vld [vmem:[%s2014_s11 + $0x18] sm:$0xf0] }
  0x14   : > { %881 = vmatpush.bf16.msra.mxu0 %v1757_v8  ;;  %v1761_v25 = vld [vmem:[%s2223_s1 + $0x48] sm:$0xff]  ;;  %v1760_v29 = vld [vmem:[%s2223_s1 + $0x40] sm:$0xff]  ;;  %v1807_v38 = vld [vmem:[%s2223_s1 + $0x1b8] sm:$0xff] }
  0x15   : > { %900 = vmatpush.bf16.msra.mxu1 %v1765_v9  ;;  %v1769_v26 = vld [vmem:[%s2223_s1 + $0x88] sm:$0xff]  ;;  %v1768_v30 = vld [vmem:[%s2223_s1 + $0x80] sm:$0xff]  ;;  %v1791_v39 = vld [vmem:[%s2223_s1 + $0x138] sm:$0xff] }
  0x16   : > { %919 = vmatpush.bf16.msra.mxu2 %v1773_v10  ;;  %v1777_v27 = vld [vmem:[%s2223_s1 + $0xc8] sm:$0xff]  ;;  %v1776_v31 = vld [vmem:[%s2223_s1 + $0xc0] sm:$0xff]  ;;  %v1799_v45 = vld [vmem:[%s2223_s1 + $0x178] sm:$0xff] }
  0x17   : > { %938 = vmatpush.bf16.msra.mxu3 %v1781_v11  ;;  %v1362_v32 = vld [vmem:[%s2014_s11] sm:$0xf]  ;;  %v1738_v34 = vld [vmem:[%s2014_s11 + $0x4] sm:$0xf]  ;;  %v1370_v36 = vld [vmem:[%s2014_s11 + $0x8] sm:$0xf] }
  0x18   : > { %882 = vmatpush.bf16.msra.mxu0 %v1756_v12  ;;  %v1364_v35 = vld [vmem:[%s2014_s11 + $0x1c] sm:$0xf0]  ;;  %v1742_v37 = vld [vmem:[%s2014_s11 + $0x20] sm:$0xf0]  ;;  %v1739_v40 = vld [vmem:[%s2014_s11 + $0xc] sm:$0xf]  ;;  %v1363_v42 = vor.u32 %v1741_v33, %v1362_v32 }
  0x19   : > { %901 = vmatpush.bf16.msra.mxu1 %v1764_v13  ;;  %v1372_v41 = vld [vmem:[%s2014_s11 + $0x24] sm:$0xf0]  ;;  %v1367_v43 = vor.u32 %v1738_v34, %v1364_v35  ;;  %v1371_v44 = vor.u32 %v1742_v37, %v1370_v36  ;;  %v1806_v47 = vld [vmem:[%s2223_s1 + $0x1b0] sm:$0xff]  ;;  %v1804_v53 = vld [vmem:[%s2223_s1 + $0x1a0] sm:$0xff] }
  0x1a   : > { %920 = vmatpush.bf16.msra.mxu2 %v1772_v14  ;;  %v1375_v46 = vor.u32 %v1739_v40, %v1372_v41  ;;  %v1790_v48 = vld [vmem:[%s2223_s1 + $0x130] sm:$0xff]  ;;  %v1805_v50 = vld [vmem:[%s2223_s1 + $0x1a8] sm:$0xff]  ;;  %v1788_v54 = vld [vmem:[%s2223_s1 + $0x120] sm:$0xff] }
  0x1b   : > { %939 = vmatpush.bf16.msra.mxu3 %v1780_v15  ;;  %v1798_v49 = vld [vmem:[%s2223_s1 + $0x170] sm:$0xff]  ;;  %v1789_v51 = vld [vmem:[%s2223_s1 + $0x128] sm:$0xff]  ;;  %v1796_v55 = vld [vmem:[%s2223_s1 + $0x160] sm:$0xff] }
  0x1c   : > { %883 = vmatpush.bf16.msra.mxu0 %v1755_v16  ;;  %v1797_v52 = vld [vmem:[%s2223_s1 + $0x168] sm:$0xff]  ;;  %v1390_v56 = vld [vmem:[%s2014_s11 + $0x38] sm:$0xf]  ;;  %v1748_v57 = vld [vmem:[%s2014_s11 + $0x50] sm:$0xf0] }
  0x1d   : > { %902 = vmatpush.bf16.msra.mxu1 %v1763_v17  ;;  %v1745_v58 = vld [vmem:[%s2014_s11 + $0x3c] sm:$0xf]  ;;  %v1392_v59 = vld [vmem:[%s2014_s11 + $0x54] sm:$0xf0]  ;;  %v1398_v60 = vld [vmem:[%s2014_s11 + $0x40] sm:$0xf]  ;;  %v1391_v2 = vor.u32 %v1748_v57, %v1390_v56 }
  0x1e   : > { %921 = vmatpush.bf16.msra.mxu2 %v1771_v18  ;;  %v1749_v61 = vld [vmem:[%s2014_s11 + $0x58] sm:$0xf0]  ;;  %v1746_v0 = vld [vmem:[%s2014_s11 + $0x44] sm:$0xf]  ;;  %v1400_v1 = vld [vmem:[%s2014_s11 + $0x5c] sm:$0xf0]  ;;  %v1395_v3 = vor.u32 %v1745_v58, %v1392_v59 }
  0x1f   : > { %940 = vmatpush.bf16.msra.mxu3 %v1779_v19  ;;  %v1803_v62 = vld [vmem:[%s2223_s1 + $0x198] sm:$0xff]  ;;  %v1399_v4 = vor.u32 %v1749_v61, %v1398_v60  ;;  %v1403_v6 = vor.u32 %v1746_v0, %v1400_v1  ;;  %v1802_v7 = vld [vmem:[%s2223_s1 + $0x190] sm:$0xff]  ;;  %v1801_v10 = vld [vmem:[%s2223_s1 + $0x188] sm:$0xff] }
  0x20   : > { %884 = vmatpush.bf16.msra.mxu0 %v1754_v20  ;;  %v1787_v63 = vld [vmem:[%s2223_s1 + $0x118] sm:$0xff]  ;;  %v1786_v8 = vld [vmem:[%s2223_s1 + $0x110] sm:$0xff]  ;;  %v1785_v11 = vld [vmem:[%s2223_s1 + $0x108] sm:$0xff] }
  0x21   : > { %903 = vmatpush.bf16.msra.mxu1 %v1762_v21  ;;  %v1795_v5 = vld [vmem:[%s2223_s1 + $0x158] sm:$0xff]  ;;  %v1794_v9 = vld [vmem:[%s2223_s1 + $0x150] sm:$0xff]  ;;  %v1793_v12 = vld [vmem:[%s2223_s1 + $0x148] sm:$0xff] }
  0x22   : > { %922 = vmatpush.bf16.msra.mxu2 %v1770_v22  ;;  %v1800_v13 = vld [vmem:[%s2223_s1 + $0x180] sm:$0xff]  ;;  %v1378_v16 = vld [vmem:[%s2014_s11 + $0x10] sm:$0xf]  ;;  %v1743_v17 = vld [vmem:[%s2014_s11 + $0x28] sm:$0xf0] }
  0x23   : > { %941 = vmatpush.bf16.msra.mxu3 %v1778_v23  ;;  %v1784_v14 = vld [vmem:[%s2223_s1 + $0x100] sm:$0xff]  ;;  %v1740_v18 = vld [vmem:[%s2014_s11 + $0x14] sm:$0xf]  ;;  %v1380_v19 = vld [vmem:[%s2014_s11 + $0x2c] sm:$0xf0]  ;;  %v1379_v22 = vor.u32 %v1743_v17, %v1378_v16 }
  0x24   : > { %885 = vmatpush.bf16.msra.mxu0 %v1753_v24  ;;  %v1792_v15 = vld [vmem:[%s2223_s1 + $0x140] sm:$0xff]  ;;  %v1386_v20 = vld [vmem:[%s2014_s11 + $0x18] sm:$0xf]  ;;  %v1744_v21 = vld [vmem:[%s2014_s11 + $0x30] sm:$0xf0]  ;;  %v1383_v23 = vor.u32 %v1740_v18, %v1380_v19 }
  0x25   : > { %904 = vmatpush.bf16.msra.mxu1 %v1761_v25  ;;  %v1387_v24 = vor.u32 %v1744_v21, %v1386_v20  ;;  %v1406_v25 = vld [vmem:[%s2014_s11 + $0x48] sm:$0xf]  ;;  %v1815_v34 = vld [vmem:[%s2225_s3 + $0x38] sm:$0xff]  ;;  %v1814_v35 = vld [vmem:[%s2225_s3 + $0x30] sm:$0xff] }
  0x26   : > { %923 = vmatpush.bf16.msra.mxu2 %v1769_v26  ;;  %v1750_v26 = vld [vmem:[%s2014_s11 + $0x60] sm:$0xf0]  ;;  %v1813_v36 = vld [vmem:[%s2225_s3 + $0x28] sm:$0xff]  ;;  %v1811_v40 = vld [vmem:[%s2225_s3 + $0x18] sm:$0xff] }
  0x27   : > { %942 = vmatpush.bf16.msra.mxu3 %v1777_v27  ;;  %v1747_v27 = vld [vmem:[%s2014_s11 + $0x4c] sm:$0xf]  ;;  %v1820_v21 = vld [vmem:[%s2227_s5 + $0x20] sm:$0xff] }
  0x28   : > { %886 = vmatpush.bf16.msra.mxu0 %v1752_v28  ;;  %v1408_v28 = vld [vmem:[%s2014_s11 + $0x64] sm:$0xf0] }
  0x29   : > { %905 = vmatpush.bf16.msra.mxu1 %v1760_v29  ;;  %v1414_v29 = vld [vmem:[%s2014_s11 + $0x50] sm:$0xf]  ;;  %v1411_v32 = vor.u32 %v1747_v27, %v1408_v28 }
  0x2a   : > { %924 = vmatpush.bf16.msra.mxu2 %v1768_v30  ;;  %v1751_v30 = vld [vmem:[%s2014_s11 + $0x68] sm:$0xf0] }
  0x2b   : > { %943 = vmatpush.bf16.msra.mxu3 %v1776_v31  ;;  %887 = vmatmul.bf16.vlgmr.msra.gmra.mxu0 %v1363_v42  ;;  %v1407_v31 = vor.u32 %v1750_v26, %v1406_v25  ;;  %v1415_v33 = vor.u32 %v1751_v30, %v1414_v29 }
  0x2c   : > { %955 = vmatpush.bf16.msrb.mxu0 %v1791_v39  ;;  %906 = vmatmul.bf16.vlgmr.msra.gmra.mxu1 %v1367_v43  ;;  %v1812_v39 = vld [vmem:[%s2225_s3 + $0x20] sm:$0xff] }
  0x2d   : > { %925 = vmatmul.bf16.vlgmr.msra.gmra.mxu2 %v1371_v44  ;;  %974 = vmatpush.bf16.msrb.mxu1 %v1799_v45  ;;  %v1810_v44 = vld [vmem:[%s2225_s3 + $0x10] sm:$0xff]  ;;  %v1809_v45 = vld [vmem:[%s2225_s3 + $0x8] sm:$0xff] }
  0x2e   : > { %993 = vmatpush.bf16.msrb.mxu2 %v1807_v38  ;;  %944 = vmatmul.bf16.vlgmr.msra.gmra.mxu3 %v1375_v46 }
  0x2f   : > { %1086 = vmatpush.bf16.msrb.mxu3 %v1815_v34 }
  0x30   : > { %956 = vmatpush.bf16.msrb.mxu0 %v1790_v48 }
  0x31   : > { %975 = vmatpush.bf16.msrb.mxu1 %v1798_v49  ;;  %v1808_v49 = vld [vmem:[%s2225_s3] sm:$0xff] }
  0x32   : > { %994 = vmatpush.bf16.msrb.mxu2 %v1806_v47 }
  0x33   : > { %1087 = vmatpush.bf16.msrb.mxu3 %v1814_v35 }
  0x34   : > { %957 = vmatpush.bf16.msrb.mxu0 %v1789_v51 }
  0x35   : > { %976 = vmatpush.bf16.msrb.mxu1 %v1797_v52 }
  0x36   : > { %995 = vmatpush.bf16.msrb.mxu2 %v1805_v50  ;;  %v1857_v50 = vld [vmem:[%s2224_s2] ss:$0 sm:$0xff] }
  0x37   : > { %1088 = vmatpush.bf16.msrb.mxu3 %v1813_v36 }
  0x38   : > { %958 = vmatpush.bf16.msrb.mxu0 %v1788_v54 }
  0x39   : > { %977 = vmatpush.bf16.msrb.mxu1 %v1796_v55 }
  0x3a   : > { %996 = vmatpush.bf16.msrb.mxu2 %v1804_v53 }
  0x3b   : > { %892 = vmatmul.bf16.gmra.mxu0 %v1391_v2  ;;  %1089 = vmatpush.bf16.msrb.mxu3 %v1812_v39  ;;  %v1823_v2 = vld [vmem:[%s2227_s5 + $0x38] sm:$0xff] }
  0x3c   : > { %959 = vmatpush.bf16.msrb.mxu0 %v1787_v63  ;;  %911 = vmatmul.bf16.gmra.mxu1 %v1395_v3 }
  0x3d   : > { %930 = vmatmul.bf16.gmra.mxu2 %v1399_v4  ;;  %978 = vmatpush.bf16.msrb.mxu1 %v1795_v5 }
  0x3e   : > { %997 = vmatpush.bf16.msrb.mxu2 %v1803_v62  ;;  %949 = vmatmul.bf16.gmra.mxu3 %v1403_v6 }
  0x3f   : > { %1090 = vmatpush.bf16.msrb.mxu3 %v1811_v40 }
  0x40   : > { %960 = vmatpush.bf16.msrb.mxu0 %v1786_v8 }
  0x41   : > { %979 = vmatpush.bf16.msrb.mxu1 %v1794_v9 }
  0x42   : > { %998 = vmatpush.bf16.msrb.mxu2 %v1802_v7  ;;  %v1822_v7 = vld [vmem:[%s2227_s5 + $0x30] sm:$0xff] }
  0x43   : > { %1091 = vmatpush.bf16.msrb.mxu3 %v1810_v44 }
  0x44   : > { %961 = vmatpush.bf16.msrb.mxu0 %v1785_v11 }
  0x45   : > { %980 = vmatpush.bf16.msrb.mxu1 %v1793_v12 }
  0x46   : > { %999 = vmatpush.bf16.msrb.mxu2 %v1801_v10 }
  0x47   : > { %1092 = vmatpush.bf16.msrb.mxu3 %v1809_v45  ;;  %v1819_v45 = vld [vmem:[%s2227_s5 + $0x18] sm:$0xff] }
  0x48   : > { %962 = vmatpush.bf16.msrb.mxu0 %v1784_v14 }
  0x49   : > { %981 = vmatpush.bf16.msrb.mxu1 %v1792_v15 }
  0x4a   : > { %1000 = vmatpush.bf16.msrb.mxu2 %v1800_v13  ;;  %v1821_v13 = vld [vmem:[%s2227_s5 + $0x28] sm:$0xff] }
  0x4b   : > { %963 = vmatmul.bf16.vlgmr.msrb.gmra.mxu0 %v1379_v22  ;;  %1093 = vmatpush.bf16.msrb.mxu3 %v1808_v49  ;;  %v1831_v49 = vld [vmem:[%s2229_s7 + $0x38] sm:$0xff] }
  0x4c   : > { %982 = vmatmul.bf16.vlgmr.msrb.gmra.mxu1 %v1383_v23  ;;  %1179 = vmatpush.bf16.msra.mxu0 %v1823_v2 }
  0x4d   : > { %1001 = vmatmul.bf16.vlgmr.msrb.gmra.mxu2 %v1387_v24  ;;  %1272 = vmatpush.bf16.msra.mxu1 %v1831_v49 }
  0x4e   : > { %1832 = vmatpush.bf16.msra.mxu2 %v1823_v2 }
  0x4f   : > { %1840 = vmatpush.bf16.msra.mxu3 %v1831_v49 }
  0x50   : > { %1180 = vmatpush.bf16.msra.mxu0 %v1822_v7 }
  0x52   : > { %1833 = vmatpush.bf16.msra.mxu2 %v1822_v7  ;;  %v1824_v7 = vld [vmem:[%s2229_s7] sm:$0xff] }
  0x54   : > { %1181 = vmatpush.bf16.msra.mxu0 %v1821_v13 }
  0x56   : > { %1834 = vmatpush.bf16.msra.mxu2 %v1821_v13 }
  0x58   : > { %1182 = vmatpush.bf16.msra.mxu0 %v1820_v21 }
  0x5a   : > { %1835 = vmatpush.bf16.msra.mxu2 %v1820_v21 }
  0x5b   : > { %968 = vmatmul.bf16.gmra.mxu0 %v1407_v31 }
  0x5c   : > { %987 = vmatmul.bf16.gmra.mxu1 %v1411_v32  ;;  %1183 = vmatpush.bf16.msra.mxu0 %v1819_v45 }
  0x5d   : > { %1006 = vmatmul.bf16.gmra.mxu2 %v1415_v33 }
  0x5e   : > { %1836 = vmatpush.bf16.msra.mxu2 %v1819_v45 }
  0xa8   : > { %v888_v37 = vpop.f32.mrf.mxu0 }
  0xa9   : > { %v907_v38 = vpop.f32.mrf.mxu1  ;;  %v889_v55 = vadd.f32 %v1857_v50, %v888_v37 }
  0xab   : > { %v908_v56 = vadd.f32 %v907_v38, %v889_v55 }
  0xb0   : > { %v926_v41 = vpop.f32.mrf.mxu2  ;;  %v890_v42 = vpop.f32.mrf.mxu0 }
  0xb1   : > { %v909_v43 = vpop.f32.mrf.mxu1  ;;  %v945_v51 = vpop.f32.mrf.mxu3  ;;  %v891_v57 = vadd.f32 %v1857_v50, %v890_v42  ;;  %v927_v62 = vadd.f32 %v926_v41, %v908_v56 }
  0xb3   : > { %v910_v63 = vadd.f32 %v909_v43, %v891_v57  ;;  %v946_v1 = vadd.f32 %v945_v51, %v927_v62  ;;  %v1830_v51 = vld [vmem:[%s2229_s7 + $0x30] sm:$0xff]  ;;  %v1828_v57 = vld [vmem:[%s2229_s7 + $0x20] sm:$0xff] }
  0xb4   : > { %1273 = vmatpush.bf16.msra.mxu1 %v1830_v51  ;;  %1841 = vmatpush.bf16.msra.mxu3 %v1830_v51 }
  0xb8   : > { %v928_v46 = vpop.f32.mrf.mxu2  ;;  %v893_v47 = vpop.f32.mrf.mxu0 }
  0xb9   : > { %v912_v48 = vpop.f32.mrf.mxu1  ;;  %v947_v61 = vpop.f32.mrf.mxu3  ;;  %v929_v0 = vadd.f32 %v928_v46, %v910_v63  ;;  %v894_v9 = vadd.f32 %v1857_v50, %v893_v47  ;;  %v1818_v46 = vld [vmem:[%s2227_s5 + $0x10] sm:$0xff]  ;;  %v1817_v47 = vld [vmem:[%s2227_s5 + $0x8] sm:$0xff] }
  0xba   : > { %1184 = vmatpush.bf16.msra.mxu0 %v1818_v46  ;;  %1837 = vmatpush.bf16.msra.mxu2 %v1818_v46 }
  0xbb   : > { %v948_v4 = vadd.f32 %v947_v61, %v929_v0  ;;  %v913_v14 = vadd.f32 %v912_v48, %v894_v9  ;;  %v1816_v48 = vld [vmem:[%s2227_s5] sm:$0xff] }
  0xbc   : > { %v1859_v9 = vld [vmem:[%s2228_s6] ss:$0 sm:$0xff] }
  0xbe   : > { %1185 = vmatpush.bf16.msra.mxu0 %v1817_v47  ;;  %1838 = vmatpush.bf16.msra.mxu2 %v1817_v47 }
  0xc0   : > { %v931_v52 = vpop.f32.mrf.mxu2  ;;  %v895_v53 = vpop.f32.mrf.mxu0 }
  0xc1   : > { %v914_v54 = vpop.f32.mrf.mxu1  ;;  %v950_v11 = vpop.f32.mrf.mxu3  ;;  %v896_v15 = vadd.f32 %v1857_v50, %v895_v53  ;;  %v932_v22 = vadd.f32 %v931_v52, %v913_v14  ;;  %v1858_v52 = vld [vmem:[%s2226_s4] ss:$0 sm:$0xff]  ;;  %v1829_v53 = vld [vmem:[%s2229_s7 + $0x28] sm:$0xff] }
  0xc2   : > { %1186 = vmatpush.bf16.msra.mxu0 %v1816_v48  ;;  %1839 = vmatpush.bf16.msra.mxu2 %v1816_v48 }
  0xc3   : > { %v915_v23 = vadd.f32 %v914_v54, %v896_v15  ;;  %v951_v30 = vadd.f32 %v950_v11, %v932_v22  ;;  %1274 = vmatpush.bf16.msra.mxu1 %v1829_v53  ;;  %1842 = vmatpush.bf16.msra.mxu3 %v1829_v53 }
  0xc7   : > { %1275 = vmatpush.bf16.msra.mxu1 %v1828_v57  ;;  %1843 = vmatpush.bf16.msra.mxu3 %v1828_v57 }
  0xc8   : > { %v933_v58 = vpop.f32.mrf.mxu2  ;;  %v964_v59 = vpop.f32.mrf.mxu0 }
  0xc9   : > { %v983_v60 = vpop.f32.mrf.mxu1  ;;  %v965_v5 = vadd.f32 %v964_v59, %v946_v1  ;;  %v934_v27 = vadd.f32 %v933_v58, %v915_v23  ;;  %v952_v29 = vpop.f32.mrf.mxu3  ;;  %v1860_v23 = vld [vmem:[%s2230_s8] ss:$0 sm:$0xff] }
  0xcb   : > { %v984_v12 = vadd.f32 %v983_v60, %v965_v5  ;;  %v953_v32 = vadd.f32 %v952_v29, %v934_v27  ;;  %v1826_v5 = vld [vmem:[%s2229_s7 + $0x10] sm:$0xff] }
  0xd0   : > { %v1002_v3 = vpop.f32.mrf.mxu2  ;;  %v966_v6 = vpop.f32.mrf.mxu0 }
  0xd1   : > { %v985_v8 = vpop.f32.mrf.mxu1  ;;  %v967_v10 = vadd.f32 %v966_v6, %v948_v4  ;;  %v1003_v16 = vadd.f32 %v1002_v3, %v984_v12  ;;  %v1827_v4 = vld [vmem:[%s2229_s7 + $0x18] sm:$0xff]  ;;  %v1825_v6 = vld [vmem:[%s2229_s7 + $0x8] sm:$0xff] }
  0xd2   : > { %1276 = vmatpush.bf16.msra.mxu1 %v1827_v4  ;;  %1844 = vmatpush.bf16.msra.mxu3 %v1827_v4 }
  0xd3   : > { %v986_v17 = vadd.f32 %v985_v8, %v967_v10  ;;  %v1012_v24 = vmax.f32 %v1003_v16, 0.0 }
  0xd6   : > { %1277 = vmatpush.bf16.msra.mxu1 %v1826_v5  ;;  %1845 = vmatpush.bf16.msra.mxu3 %v1826_v5 }
  0xd8   : > { %v1004_v18 = vpop.f32.mrf.mxu2  ;;  %v969_v20 = vpop.f32.mrf.mxu0 }
  0xd9   : > { %v1005_v19 = vadd.f32 %v1004_v18, %v986_v17  ;;  %v988_v26 = vpop.f32.mrf.mxu1  ;;  %v970_v33 = vadd.f32 %v969_v20, %v951_v30 }
  0xda   : > { %1278 = vmatpush.bf16.msra.mxu1 %v1825_v6  ;;  %1846 = vmatpush.bf16.msra.mxu3 %v1825_v6 }
  0xdb   : > { %v1013_v25 = vmax.f32 %v1005_v19, 0.0  ;;  %v989_v36 = vadd.f32 %v988_v26, %v970_v33 }
  0xdd   : > { %v1016_v28 = vpack.c.bf16 %v1013_v25, %v1012_v24 }
  0xde   : > { %1279 = vmatpush.bf16.msra.mxu1 %v1824_v7  ;;  %1847 = vmatpush.bf16.msra.mxu3 %v1824_v7 }
  0xdf   : > { %1094 = vmatmul.bf16.vlgmr.msrb.gmra.mxu3 %v1016_v28 }
  0xe0   : > { %v1007_v31 = vpop.f32.mrf.mxu2  ;;  %v971_v34 = vpop.f32.mrf.mxu0 }
  0xe1   : > { %v972_v35 = vadd.f32 %v971_v34, %v953_v32  ;;  %v990_v37 = vpop.f32.mrf.mxu1  ;;  %v1008_v38 = vadd.f32 %v1007_v31, %v989_v36 }
  0xe3   : > { %v991_v39 = vadd.f32 %v990_v37, %v972_v35  ;;  %v1014_v42 = vmax.f32 %v1008_v38, 0.0 }
  0xe8   : > { %v1009_v40 = vpop.f32.mrf.mxu2 }
  0xe9   : > { %v1010_v41 = vadd.f32 %v1009_v40, %v991_v39 }
  0xeb   : > { %v1015_v43 = vmax.f32 %v1010_v41, 0.0 }
  0xed   : > { %v1017_v44 = vpack.c.bf16 %v1015_v43, %v1014_v42 }
  0xef   : > { %1099 = vmatmul.bf16.gmra.mxu3 %v1017_v44 }
 0x162   : > { %v1095_v50 = vpop.f32.mrf.mxu3 }
 0x163   : > { %v1096_v54 = vadd.f32 %v1858_v52, %v1095_v50 }
 0x165   : > { %v1105_v58 = vmax.f32 %v1096_v54, 0.0 }
 0x16a   : > { %v1097_v55 = vpop.f32.mrf.mxu3 }
 0x16b   : > { %v1098_v56 = vadd.f32 %v1858_v52, %v1097_v55 }
 0x16d   : > { %v1106_v59 = vmax.f32 %v1098_v56, 0.0 }
 0x16f   : > { %v1109_v60 = vpack.c.bf16 %v1106_v59, %v1105_v58 }
 0x171   : > { %1187 = vmatmul.bf16.vlgmr.msra.gmra.mxu0 %v1109_v60 }
 0x172   : > { %v1100_v61 = vpop.f32.mrf.mxu3 }
 0x173   : > { %v1101_v62 = vadd.f32 %v1858_v52, %v1100_v61 }
 0x175   : > { %v1107_v1 = vmax.f32 %v1101_v62, 0.0 }
 0x17a   : > { %v1102_v63 = vpop.f32.mrf.mxu3 }
 0x17b   : > { %v1103_v0 = vadd.f32 %v1858_v52, %v1102_v63 }
 0x17d   : > { %v1108_v2 = vmax.f32 %v1103_v0, 0.0 }
 0x17f   : > { %v1110_v3 = vpack.c.bf16 %v1108_v2, %v1107_v1 }
 0x181   : > { %1192 = vmatmul.bf16.vlgmr.msra.gmra.mxu2 %v1110_v3 }
 0x1ee   : > { %v1188_v8 = vpop.f32.mrf.mxu0 }
 0x1ef   : > { %v1189_v10 = vadd.f32 %v1859_v9, %v1188_v8 }
 0x1f1   : > { %v1198_v13 = vmax.f32 %v1189_v10, 0.0 }
 0x1f6   : > { %v1190_v11 = vpop.f32.mrf.mxu0 }
 0x1f7   : > { %v1191_v12 = vadd.f32 %v1859_v9, %v1190_v11 }
 0x1f9   : > { %v1199_v14 = vmax.f32 %v1191_v12, 0.0 }
 0x1fb   : > { %v1202_v15 = vpack.c.bf16 %v1199_v14, %v1198_v13 }
 0x1fd   : > { %1280 = vmatmul.bf16.vlgmr.msra.gmra.mxu1 %v1202_v15 }
 0x204   : > { %v1193_v16 = vpop.f32.mrf.mxu2 }
 0x205   : > { %v1194_v17 = vadd.f32 %v1859_v9, %v1193_v16 }
 0x207   : > { %v1200_v20 = vmax.f32 %v1194_v17, 0.0 }
 0x20c   : > { %v1195_v18 = vpop.f32.mrf.mxu2 }
 0x20d   : > { %v1196_v19 = vadd.f32 %v1859_v9, %v1195_v18 }
 0x20f   : > { %v1201_v21 = vmax.f32 %v1196_v19, 0.0 }
 0x211   : > { %v1203_v22 = vpack.c.bf16 %v1201_v21, %v1200_v20 }
 0x213   : > { %1285 = vmatmul.bf16.vlgmr.msra.gmra.mxu3 %v1203_v22 }
 0x27a   : > { %v1281_v24 = vpop.f32.mrf.mxu1 }
 0x27b   : > { %v1282_v25 = vadd.f32 %v1860_v23, %v1281_v24 }
 0x27d   : > { %1291 = vst [vmem:[%s337_s18] sm:$0xff] %v1282_v25 }
 0x282   : > { %v1283_v26 = vpop.f32.mrf.mxu1 }
 0x283   : > { %v1284_v27 = vadd.f32 %v1860_v23, %v1283_v26 }
 0x285   : > { %1292 = vst [vmem:[%s337_s18 + $0x8] sm:$0xff] %v1284_v27 }
 0x296   : > { %v1286_v28 = vpop.f32.mrf.mxu3 }
 0x297   : > { %v1287_v29 = vadd.f32 %v1860_v23, %v1286_v28 }
 0x299   : > { %1293 = vst [vmem:[%s337_s18 + $0x10] sm:$0xff] %v1287_v29 }
 0x29e   : > { %v1288_v30 = vpop.f32.mrf.mxu3 }
 0x29f   : > { %v1289_v31 = vadd.f32 %v1860_v23, %v1288_v30 }
 0x2a1   : > { %1294 = vst [vmem:[%s337_s18 + $0x18] sm:$0xff] %v1289_v31 }
 0x2a2 PF: > { %s19_s30 = sadd.s32 1, %s1867_s30  }
 0x2a3   : > { %p16_p4 = scmp.ge.s32.totalorder %s19_s30, 4  }
 0x2a5   :  { %18 = sbr.rel (!%p16_p4) target bundleno = 1 (0x1), region = 86 }

</bundles_post_ra>
